<compile_context>
chip_gen: v7x
topology: tpu7x:2x2x1
jax: 0.10.0
libtpu: 0.0.40
codegen_flags: <defaults>
</compile_context>

<pallas_src>
import jax
import jax.numpy as jnp
from jax import lax
from jax.experimental import pallas as pl
from jax.experimental.pallas import tpu as pltpu

TOTAL_BITS = 8
FRAC_BITS = 4
BN_EPS = 1e-5

_FACTOR = float(1 << FRAC_BITS)
_MIN_RATIONAL = -(2 ** (TOTAL_BITS - 1)) / _FACTOR
_MAX_RATIONAL = (2 ** (TOTAL_BITS - 1) - 1) / _FACTOR


def _quantize(v):
    """Fixed-point quantize: clamp to representable range, round to nearest (ties-to-even)."""
    v = jnp.clip(v, _MIN_RATIONAL, _MAX_RATIONAL)
    return jnp.round(v * _FACTOR) / _FACTOR


def _round_up(v, m):
    return ((v + m - 1) // m) * m


def batch_normed_linear_kernel(x_ref, wt_ref, p_ref, o_ref):
    """p_ref rows: 0 = quantized bias, 1 = gamma, 2 = beta (rows 3..7 are sublane padding)."""
    k = pl.program_id(1)

    @pl.when(k == 0)
    def _():
        o_ref[...] = jnp.zeros_like(o_ref)

    # x (N, tk) @ W^T (tk, tn) on the MXU; bf16 weights cast to f32 (exact), f32 accumulation
    # directly into the resident output tile (no scratch).
    o_ref[...] += lax.dot_general(
        x_ref[...], wt_ref[...].astype(jnp.float32),
        dimension_numbers=(((1,), (0,)), ((), ())),
        preferred_element_type=jnp.float32,
    )

    @pl.when(k == pl.num_programs(1) - 1)
    def _():
        # Quantized matmul result, then quantized bias add.  The round in the fixed-point add is
        # a no-op (both operands lie on the 1/16 grid; their sum is exact in f32) -> clip only.
        y = _quantize(o_ref[...])
        y = jnp.clip(y + p_ref[0:1, :], _MIN_RATIONAL, _MAX_RATIONAL)
        o_ref[...] = y  # stage in VMEM so the reduction passes stream through the ref

        # BatchNorm1d (training-mode): per-feature batch mean / biased variance, folded into a
        # single per-feature scale/shift FMA over the tile.
        mean = jnp.mean(o_ref[...], axis=0, keepdims=True)
        var = jnp.mean((o_ref[...] - mean) ** 2, axis=0, keepdims=True)
        s = p_ref[1:2, :] * lax.rsqrt(var + BN_EPS)   # rsqrt rides the EUP slot
        t = p_ref[2:3, :] - mean * s
        o_ref[...] = _quantize(o_ref[...] * s + t)    # final fixed-point quantization


def make_batch_normed_linear(w, b, gamma, beta):
    """Factory: prepares (quantizes / transposes / pads / packs) the static parameters ONCE and
    returns a jitted forward(x) mirroring BatchNormedLinear.forward (1-D or 2-D input)."""
    out_f, in_f = w.shape

    # Lane-dense output tiles; prefer >= 2 out-feature tiles so both v7x TensorCores get work.
    out_f_pad = _round_up(out_f, 128)
    tile_n = 256 if (out_f_pad >= 512 and out_f_pad % 256 == 0) else 128

    # Keep x resident (single K step -> x is DMA'd once and reused for every out-feature tile)
    # for moderate in_features; otherwise tile K at 512 (safe within v7x's 64 MiB VMEM).
    in_f_pad = _round_up(in_f, 128)
    if in_f_pad <= 2048:
        tile_k = in_f_pad
    else:
        tile_k = 512
        in_f_pad = _round_up(in_f, tile_k)

    # ---- static parameter prep (runs once; weights do not change between forwards) -----------
    qw_t = _quantize(w.astype(jnp.float32)).T                       # (in_f, out_f): MXU-natural
    w_p = jnp.pad(qw_t, ((0, in_f_pad - in_f), (0, out_f_pad - out_f)))
    # 8-bit fixed point (multiples of 1/16, |v| < 8) is exactly representable in bf16: halves the
    # W HBM stream and the W double buffer without changing the numerics.
    w_p = w_p.astype(jnp.bfloat16)

    # bias / gamma / beta packed into one (8, out_f_pad) array -> one BlockSpec / DMA, not three.
    params = jnp.zeros((8, out_f_pad), jnp.float32)
    params = params.at[0, :out_f].set(_quantize(b.astype(jnp.float32)))
    params = params.at[1, :out_f].set(gamma.astype(jnp.float32))
    params = params.at[2, :out_f].set(beta.astype(jnp.float32))
    # Padded feature columns see zero activations and gamma=0 -> output 0; sliced off below, so
    # the real features' batch statistics are untouched.

    grid = (out_f_pad // tile_n, in_f_pad // tile_k)   # (out-feature tiles, K tiles)

    try:
        vmem_cap = int(pltpu.get_tpu_info().vmem_capacity_bytes)
    except Exception:
        vmem_cap = 64 * 1024 * 1024
    vmem_cap = int(0.75 * vmem_cap)   # headroom: ~48 MiB on v7x, ~96 MiB on v5e/v6e

    @jax.jit
    def forward(x):
        has_batches = x.ndim == 2
        # TODO(synk): torch BatchNorm1d (training) rejects batch size 1; the 1-D path only mirrors
        # the module's view(1, -1) reshape semantics.
        x2 = x if has_batches else x.reshape(1, -1)
        n = x2.shape[0]

        # Zero-pad K (matmul-neutral); batch N is NOT padded so BN statistics stay exact.
        x_p = jnp.pad(x2.astype(jnp.float32), ((0, 0), (0, in_f_pad - in_f)))

        # VMEM budget from the actual footprint: double-buffered x / W / params + resident output.
        needed = 2 * (n * tile_k * 4 + tile_k * tile_n * 2 + 8 * tile_n * 4 + n * tile_n * 4)
        vmem_limit = min(max(needed + (1 << 20), 32 * 1024 * 1024), vmem_cap)

        out = pl.pallas_call(
            batch_normed_linear_kernel,
            out_shape=jax.ShapeDtypeStruct((n, out_f_pad), jnp.float32),
            grid_spec=pltpu.PrefetchScalarGridSpec(
                num_scalar_prefetch=0,
                grid=grid,
                in_specs=[
                    pl.BlockSpec((n, tile_k), lambda j, k: (0, k)),        # x (resident if 1 K step)
                    pl.BlockSpec((tile_k, tile_n), lambda j, k: (k, j)),   # W^T (K, N), bf16
                    pl.BlockSpec((8, tile_n), lambda j, k: (0, j)),        # packed bias/gamma/beta
                ],
                out_specs=pl.BlockSpec((n, tile_n), lambda j, k: (0, j)),  # resident accumulator
            ),
            compiler_params=pltpu.CompilerParams(
                dimension_semantics=("parallel", "arbitrary"),
                vmem_limit_bytes=vmem_limit,
            ),
        )(x_p, w_p, params)

        out = out[:, :out_f]
        return out if has_batches else out.reshape(-1)

    return forward


if __name__ == "__main__":
    N, IN_F, OUT_F = 8, 64, 32

    key = jax.random.PRNGKey(0)
    k1, k2, k3, k4, k5 = jax.random.split(key, 5)

    # Deterministic parameter init (torch.nn.Linear-style uniform bound; BN affine ~ 1 / ~0).
    bound = 1.0 / (IN_F ** 0.5)
    w = jax.random.uniform(k1, (OUT_F, IN_F), jnp.float32, minval=-bound, maxval=bound)
    b = jax.random.uniform(k2, (OUT_F,), jnp.float32, minval=-bound, maxval=bound)
    gamma = 1.0 + 0.1 * jax.random.normal(k3, (OUT_F,), jnp.float32)
    beta = 0.1 * jax.random.normal(k4, (OUT_F,), jnp.float32)

    x = jax.random.normal(k5, (N, IN_F), jnp.float32)

    layer = make_batch_normed_linear(w, b, gamma, beta)
    out = jax.block_until_ready(layer(x))

    # Pure-JAX reference of the same forward semantics.
    qw = _quantize(w)
    qb = _quantize(b)
    y = _quantize(x @ qw.T)
    y = _quantize(y + qb)
    m = y.mean(axis=0)
    v = ((y - m) ** 2).mean(axis=0)
    ref = _quantize(gamma * (y - m) / jnp.sqrt(v + BN_EPS) + beta)

    assert out.shape == (N, OUT_F)
    assert jnp.allclose(out, ref, atol=1e-5), "kernel mismatch vs reference"
    print("KERNEL_OK")
</pallas_src>

<mosaic_0001>
module attributes {stable_mosaic.version = 11 : i64} {
  func.func @batch_normed_linear_kernel(%arg0: i32, %arg1: i32, %arg2: memref<8x128xf32, #tpu.memory_space<vmem>>, %arg3: memref<128x128xbf16, #tpu.memory_space<vmem>>, %arg4: memref<8x128xf32, #tpu.memory_space<vmem>>, %arg5: memref<8x128xf32, #tpu.memory_space<vmem>>) attributes {dimension_semantics = [#tpu.dimension_semantics<parallel>, #tpu.dimension_semantics<arbitrary>], iteration_bounds = array<i64: 1, 1>, scalar_prefetch = 0 : i64, scratch_operands = 0 : i64, tpu.core_type = #tpu.core_type<tc>, window_params = [{transform_indices = @transform_0, window_bounds = array<i64: 8, 128>}, {transform_indices = @transform_1, window_bounds = array<i64: 128, 128>}, {transform_indices = @transform_2, window_bounds = array<i64: 8, 128>}, {transform_indices = @transform_3, window_bounds = array<i64: 8, 128>}]} {
    %c0_i32 = arith.constant 0 : i32
    %0 = arith.cmpi eq, %arg1, %c0_i32 : i32
    %1 = arith.extui %0 : i1 to i32
    %c0_i32_0 = arith.constant 0 : i32
    %2 = arith.cmpi ne, %1, %c0_i32_0 : i32
    scf.if %2 {
      %cst_10 = arith.constant 0.000000e+00 : f32
      %13 = vector.broadcast %cst_10 : f32 to vector<8x128xf32>
      %c0_11 = arith.constant 0 : index
      %c0_12 = arith.constant 0 : index
      %14 = vector.load %arg5[%c0_11, %c0_12] : memref<8x128xf32, #tpu.memory_space<vmem>>, vector<8x128xf32>
      tpu.vector_store %arg5[%c0_11, %c0_12], %13 {strides = array<i32>} : memref<8x128xf32, #tpu.memory_space<vmem>>, vector<8x128xf32>,
    } else {
    }
    %c0 = arith.constant 0 : index
    %c0_1 = arith.constant 0 : index
    %3 = vector.load %arg5[%c0, %c0_1] : memref<8x128xf32, #tpu.memory_space<vmem>>, vector<8x128xf32>
    %c0_2 = arith.constant 0 : index
    %c0_3 = arith.constant 0 : index
    %4 = vector.load %arg2[%c0_2, %c0_3] : memref<8x128xf32, #tpu.memory_space<vmem>>, vector<8x128xf32>
    %c0_4 = arith.constant 0 : index
    %c0_5 = arith.constant 0 : index
    %5 = vector.load %arg3[%c0_4, %c0_5] : memref<128x128xbf16, #tpu.memory_space<vmem>>, vector<128x128xbf16>
    %6 = arith.extf %5 : vector<128x128xbf16> to vector<128x128xf32>
    %cst = arith.constant dense<0.000000e+00> : vector<8x128xf32>
    %7 = tpu.matmul %4, %6, %cst {dimension_numbers = #tpu.dot_dimension_numbers<[1], [0], [0], [1], [0, 0, 1, 1], [], []>} : vector<8x128xf32>, vector<128x128xf32>, vector<8x128xf32> -> vector<8x128xf32>
    %8 = arith.addf %3, %7 : vector<8x128xf32>
    %c0_6 = arith.constant 0 : index
    %c0_7 = arith.constant 0 : index
    %9 = vector.load %arg5[%c0_6, %c0_7] : memref<8x128xf32, #tpu.memory_space<vmem>>, vector<8x128xf32>
    tpu.vector_store %arg5[%c0_6, %c0_7], %8 {strides = array<i32>} : memref<8x128xf32, #tpu.memory_space<vmem>>, vector<8x128xf32>,
    %c0_i32_8 = arith.constant 0 : i32
    %10 = arith.cmpi eq, %arg1, %c0_i32_8 : i32
    %11 = arith.extui %10 : i1 to i32
    %c0_i32_9 = arith.constant 0 : i32
    %12 = arith.cmpi ne, %11, %c0_i32_9 : i32
    scf.if %12 {
      %c0_10 = arith.constant 0 : index
      %c0_11 = arith.constant 0 : index
      %13 = vector.load %arg5[%c0_10, %c0_11] : memref<8x128xf32, #tpu.memory_space<vmem>>, vector<8x128xf32>
      %cst_12 = arith.constant -8.000000e+00 : f32
      %cst_13 = arith.constant 7.937500e+00 : f32
      %14 = vector.broadcast %cst_12 : f32 to vector<8x128xf32>
      %15 = arith.maximumf %14, %13 : vector<8x128xf32>
      %16 = vector.broadcast %cst_13 : f32 to vector<8x128xf32>
      %17 = arith.minimumf %16, %15 : vector<8x128xf32>
      %cst_14 = arith.constant 1.600000e+01 : f32
      %18 = vector.broadcast %cst_14 : f32 to vector<8x128xf32>
      %19 = arith.mulf %17, %18 : vector<8x128xf32>
      %20 = math.roundeven %19 : vector<8x128xf32>
      %cst_15 = arith.constant 1.600000e+01 : f32
      %21 = vector.broadcast %cst_15 : f32 to vector<8x128xf32>
      %22 = arith.divf %20, %21 : vector<8x128xf32>
      %c0_16 = arith.constant 0 : index
      %c0_17 = arith.constant 0 : index
      %23 = vector.load %arg4[%c0_16, %c0_17] : memref<8x128xf32, #tpu.memory_space<vmem>>, vector<1x128xf32>
      %24 = vector.broadcast %23 : vector<1x128xf32> to vector<8x128xf32>
      %25 = arith.addf %22, %24 : vector<8x128xf32>
      %cst_18 = arith.constant -8.000000e+00 : f32
      %cst_19 = arith.constant 7.937500e+00 : f32
      %26 = vector.broadcast %cst_18 : f32 to vector<8x128xf32>
      %27 = arith.maximumf %26, %25 : vector<8x128xf32>
      %28 = vector.broadcast %cst_19 : f32 to vector<8x128xf32>
      %29 = arith.minimumf %28, %27 : vector<8x128xf32>
      %c0_20 = arith.constant 0 : index
      %c0_21 = arith.constant 0 : index
      %30 = vector.load %arg5[%c0_20, %c0_21] : memref<8x128xf32, #tpu.memory_space<vmem>>, vector<8x128xf32>
      tpu.vector_store %arg5[%c0_20, %c0_21], %29 {strides = array<i32>} : memref<8x128xf32, #tpu.memory_space<vmem>>, vector<8x128xf32>,
      %c0_22 = arith.constant 0 : index
      %c0_23 = arith.constant 0 : index
      %31 = vector.load %arg5[%c0_22, %c0_23] : memref<8x128xf32, #tpu.memory_space<vmem>>, vector<8x128xf32>
      %cst_24 = arith.constant dense<0.000000e+00> : vector<128xf32>
      %32 = vector.multi_reduction <add>, %31, %cst_24 [0] : vector<8x128xf32> to vector<128xf32>
      %33 = vector.shape_cast %32 : vector<128xf32> to vector<1x128xf32>
      %cst_25 = arith.constant 8.000000e+00 : f32
      %34 = vector.broadcast %cst_25 : f32 to vector<1x128xf32>
      %35 = arith.divf %33, %34 : vector<1x128xf32>
      %c0_26 = arith.constant 0 : index
      %c0_27 = arith.constant 0 : index
      %36 = vector.load %arg5[%c0_26, %c0_27] : memref<8x128xf32, #tpu.memory_space<vmem>>, vector<8x128xf32>
      %37 = vector.broadcast %35 : vector<1x128xf32> to vector<8x128xf32>
      %38 = arith.subf %36, %37 : vector<8x128xf32>
      %39 = arith.mulf %38, %38 : vector<8x128xf32>
      %cst_28 = arith.constant dense<0.000000e+00> : vector<128xf32>
      %40 = vector.multi_reduction <add>, %39, %cst_28 [0] : vector<8x128xf32> to vector<128xf32>
      %41 = vector.shape_cast %40 : vector<128xf32> to vector<1x128xf32>
      %cst_29 = arith.constant 8.000000e+00 : f32
      %42 = vector.broadcast %cst_29 : f32 to vector<1x128xf32>
      %43 = arith.divf %41, %42 : vector<1x128xf32>
      %c1 = arith.constant 1 : index
      %c0_30 = arith.constant 0 : index
      %44 = vector.load %arg4[%c1, %c0_30] : memref<8x128xf32, #tpu.memory_space<vmem>>, vector<1x128xf32>
      %cst_31 = arith.constant 9.99999974E-6 : f32
      %45 = vector.broadcast %cst_31 : f32 to vector<1x128xf32>
      %46 = arith.addf %43, %45 : vector<1x128xf32>
      %47 = math.rsqrt %46 : vector<1x128xf32>
      %48 = arith.mulf %44, %47 : vector<1x128xf32>
      %c2 = arith.constant 2 : index
      %c0_32 = arith.constant 0 : index
      %49 = vector.load %arg4[%c2, %c0_32] : memref<8x128xf32, #tpu.memory_space<vmem>>, vector<1x128xf32>
      %50 = arith.mulf %35, %48 : vector<1x128xf32>
      %51 = arith.subf %49, %50 : vector<1x128xf32>
      %c0_33 = arith.constant 0 : index
      %c0_34 = arith.constant 0 : index
      %52 = vector.load %arg5[%c0_33, %c0_34] : memref<8x128xf32, #tpu.memory_space<vmem>>, vector<8x128xf32>
      %53 = vector.broadcast %48 : vector<1x128xf32> to vector<8x128xf32>
      %54 = arith.mulf %52, %53 : vector<8x128xf32>
      %55 = vector.broadcast %51 : vector<1x128xf32> to vector<8x128xf32>
      %56 = arith.addf %54, %55 : vector<8x128xf32>
      %cst_35 = arith.constant -8.000000e+00 : f32
      %cst_36 = arith.constant 7.937500e+00 : f32
      %57 = vector.broadcast %cst_35 : f32 to vector<8x128xf32>
      %58 = arith.maximumf %57, %56 : vector<8x128xf32>
      %59 = vector.broadcast %cst_36 : f32 to vector<8x128xf32>
      %60 = arith.minimumf %59, %58 : vector<8x128xf32>
      %cst_37 = arith.constant 1.600000e+01 : f32
      %61 = vector.broadcast %cst_37 : f32 to vector<8x128xf32>
      %62 = arith.mulf %60, %61 : vector<8x128xf32>
      %63 = math.roundeven %62 : vector<8x128xf32>
      %cst_38 = arith.constant 1.600000e+01 : f32
      %64 = vector.broadcast %cst_38 : f32 to vector<8x128xf32>
      %65 = arith.divf %63, %64 : vector<8x128xf32>
      %c0_39 = arith.constant 0 : index
      %c0_40 = arith.constant 0 : index
      %66 = vector.load %arg5[%c0_39, %c0_40] : memref<8x128xf32, #tpu.memory_space<vmem>>, vector<8x128xf32>
      tpu.vector_store %arg5[%c0_39, %c0_40], %65 {strides = array<i32>} : memref<8x128xf32, #tpu.memory_space<vmem>>, vector<8x128xf32>,
    } else {
    }
    return
  }
  func.func @transform_0(%arg0: i32, %arg1: i32) -> (i32, i32) {
    %c0_i32 = arith.constant 0 : i32
    %c0_i32_0 = arith.constant 0 : i32
    return %c0_i32, %arg1 : i32, i32
  }
  func.func @transform_1(%arg0: i32, %arg1: i32) -> (i32, i32) {
    %c0_i32 = arith.constant 0 : i32
    return %arg1, %arg0 : i32, i32
  }
  func.func @transform_2(%arg0: i32, %arg1: i32) -> (i32, i32) {
    %c0_i32 = arith.constant 0 : i32
    %c0_i32_0 = arith.constant 0 : i32
    return %c0_i32, %arg0 : i32, i32
  }
  func.func @transform_3(%arg0: i32, %arg1: i32) -> (i32, i32) {
    %c0_i32 = arith.constant 0 : i32
    %c0_i32_0 = arith.constant 0 : i32
    return %c0_i32, %arg0 : i32, i32
  }
}

</mosaic_0001>

<bundles_post_ra>
// kernel: forward.1
= control target key start
LH: loop header
LB: loop body
LE: loop exit
PB: predicated region body
PF: predicated region fallthrough
CT: control target
= control target key end

     0   :  { %8 = vsyncpa [#allocation3], 0  ;;  %s453_s0 = inlined_call_operand.vmem [shape: f32[8,128], index: 0, kind: input, shape index: {}]   ;;  %s454_s1 = inlined_call_operand.hbm [shape: bf16[128,128], index: 1, kind: input, shape index: {}]   ;;  %s455_s2 = inlined_call_operand.vmem [shape: f32[8,128], index: 2, kind: input, shape index: {}]   ;;  %s456_s3 = inlined_call_operand.hbm [shape: f32[8,128], index: 3, kind: output, shape index: {}]  }
   0x1   :  { %9 = vsyncpa [#allocation4], 0  ;;  %s390_s12 = smov [#allocation2]   ;;  %s342_s16 = scalar_lea.hbm %s454_s1, 1024 }
   0x2   :  { %s17_s13 = sshll.u32 %s390_s12, 4  ;;  %p343_p0 = scmp.ne.s32.totalorder %s454_s1, %s342_s16  ;;  %s18_s13 = int_to_ptr.vmem [resolvable:$true] %s17_s13 }
   0x3   :  { %p346_p1 = scmp.lt.u32.totalorder %s342_s16, %s454_s1 }
   0x5   :  { %p348_p2 = pnand %p346_p1, %p343_p0 }
   0x7   :  { %351 = shalt.err (!%p348_p2)
}
   0x8   :  { %s352_s21 = scalar_lea.vmem %s18_s13, 1024  ;;  %p357_p4 = scmp.lt.s32.totalorder %s18_s13, %s18_s13 }
   0x9   :  { %p353_p3 = scmp.ne.s32.totalorder %s18_s13, %s352_s21  ;;  %p358_p5 = scmp.lt.s32.totalorder %s352_s21, %s352_s21 }
   0xb   :  { %p359_p6 = por %p358_p5, %p357_p4 }
   0xd   :  { %p360_p7 = pnand %p359_p6, %p353_p3 }
   0xf   :  { %363 = shalt.err (!%p360_p7)
}
  0x10   :  { %s391_s22 = smov 64   ;;  %s392_s23 = smov 4  }
  0x11   :  { %23 = dma.hbm_to_vmem [thread:$0]  %s454_s1, 1024, %s18_s13, [#allocation3], %s391_s22, %s391_s22, %s392_s23  }
  0x12   :  { %386 = dma.done.wait [#allocation3], 1024  }
  0x13   :  { %387 = vsyncadd [#allocation3], 4294966272  ;;  %v393_v0 = vmov 0.0|0.0   ;;  %vm394_vm0 = vmmov 0   ;;  %v395_v1 = vmov 0.0   ;;  %v217_v2 = vld [vmem:[#allocation2] sm:$0xff]   ;;  %v184_v39 = vlaneseq }
  0x14   :  { %307 = vmatprep.subr.bf16.mxu0 %v393_v0  ;;  %304 = vmatprep.mubr.msk.f32.mxu0 %vm394_vm0, %v395_v1  ;;  %v248_v3 = vld [vmem:[#allocation2 + $0x8] sm:$0xff]   ;;  %v249_v4 = vld [vmem:[#allocation2 + $0x10] sm:$0xff]   ;;  %v250_v5 = vld [vmem:[#allocation2 + $0x18] sm:$0xff]   ;;  %s396_s5 = smov [#allocation5]  }
  0x15   :  { %309 = vmatpush3.bf16.msra.mxu0 %v217_v2  ;;  %v251_v6 = vld [vmem:[#allocation2 + $0x20] sm:$0xff]   ;;  %v252_v7 = vld [vmem:[#allocation2 + $0x28] sm:$0xff]   ;;  %v253_v8 = vld [vmem:[#allocation2 + $0x30] sm:$0xff]   ;;  %v185_v40 = vshrl.u32 %v184_v39, 7  ;;  %s206_s6 = sshll.u32 %s396_s5, 4  ;;  %s207_s6 = int_to_ptr.vmem [resolvable:$true] %s206_s6 }
  0x16   :  { %310 = vmatprep.subr.bf16.mxu0 %v393_v0  ;;  %v254_v9 = vld [vmem:[#allocation2 + $0x38] sm:$0xff]   ;;  %v35_v10 = vld [vmem:[%s453_s0] sm:$0xff]  ;;  %s364_s7 = scalar_lea.vmem %s207_s6, 128  ;;  %p369_p9 = scmp.lt.s32.totalorder %s207_s6, %s207_s6 }
  0x17   :  { %v215_v17 = vld [vmem:[%s455_s2] ss:$0 sm:$0xff]  ;;  %v177_v41 = vld [vmem:[%s455_s2 + $0x1] sm:$0x1]  ;;  %v186_v42 = vsub.s32 0, %v185_v40  ;;  %p365_p8 = scmp.ne.s32.totalorder %s207_s6, %s364_s7  ;;  %p370_p10 = scmp.lt.s32.totalorder %s364_s7, %s364_s7 }
  0x18   :  { %v181_v45 = vld [vmem:[%s455_s2 + $0x2] sm:$0x1] }
  0x19   :  { %312 = vmatpush3.bf16.msra.mxu0 %v248_v3  ;;  %p371_p11 = por %p370_p10, %p369_p9 }
  0x1a   :  { %313 = vmatprep.subr.bf16.mxu0 %v393_v0 }
  0x1b   :  { %p372_p12 = pnand %p371_p11, %p365_p8 }
  0x1d   :  { %315 = vmatpush3.bf16.msra.mxu0 %v249_v4 }
  0x1e   :  { %316 = vmatprep.subr.bf16.mxu0 %v393_v0 }
  0x21   :  { %318 = vmatpush3.bf16.msra.mxu0 %v250_v5 }
  0x22   :  { %319 = vmatprep.subr.bf16.mxu0 %v393_v0 }
  0x25   :  { %321 = vmatpush3.bf16.msra.mxu0 %v251_v6 }
  0x26   :  { %322 = vmatprep.subr.bf16.mxu0 %v393_v0 }
  0x29   :  { %324 = vmatpush3.bf16.msra.mxu0 %v252_v7 }
  0x2a   :  { %325 = vmatprep.subr.bf16.mxu0 %v393_v0 }
  0x2d   :  { %327 = vmatpush3.bf16.msra.mxu0 %v253_v8 }
  0x2e   :  { %328 = vmatprep.subr.bf16.mxu0 %v393_v0 }
  0x31   :  { %330 = vmatpush3.bf16.msra.mxu0 %v254_v9 }
  0x34   :  { %305 = vmatmul.mubr.f32.vlgmr.msra.gmra.mrb[0].mxu0 %v35_v10 }
 0x107   :  { %v134_v11 = vpop.f32.mrb[0].mxu0 }
 0x108   :  { %v306_v12 = vpop.f32.mrb[1].mxu0  ;;  %v144_v13 = vmax.f32 %v134_v11, -8.0 }
 0x10a   :  { %v145_v14 = vmin.f32 %v144_v13, 7.9375 }
 0x10c   :  { %v146_v15 = vmul.f32 16.0, %v145_v14 }
 0x10e   :  { %v331_v16 = vround.rtne.f32 %v146_v15 }
 0x110   :  { %v149_v18 = vmul.f32 0.0625, %v331_v16 }
 0x112   :  { %v155_v19 = vadd.f32 %v215_v17, %v149_v18 }
 0x114   :  { %v156_v20 = vmax.f32 %v155_v19, -8.0 }
 0x116   :  { %v157_v21 = vmin.f32 %v156_v20, 7.9375 }
 0x118   :  { %v160_v22 = vrot.slane %v157_v21, 4 }
 0x11a   :  { %v161_v23 = vadd.f32 %v160_v22, %v157_v21 }
 0x11c   :  { %v162_v24 = vrot.slane %v161_v23, 2 }
 0x11e   :  { %v163_v25 = vadd.f32 %v162_v24, %v161_v23 }
 0x120   :  { %v164_v26 = vrot.slane %v163_v25, 1 }
 0x122   :  { %v165_v27 = vadd.f32 %v164_v26, %v163_v25 }
 0x124   :  { %v167_v28 = vmul.f32 0.125, %v165_v27 }
 0x126   :  { %v168_v29 = vsub.f32 %v157_v21, %v167_v28 }
 0x128   :  { %v169_v30 = vmul.f32 %v168_v29, %v168_v29 }
 0x12a   :  { %v170_v31 = vrot.slane %v169_v30, 4 }
 0x12c   :  { %v171_v32 = vadd.f32 %v170_v31, %v169_v30 }
 0x12e   :  { %v172_v33 = vrot.slane %v171_v32, 2 }
 0x130   :  { %v173_v34 = vadd.f32 %v172_v33, %v171_v32 }
 0x132   :  { %v174_v35 = vrot.slane %v173_v34, 1 }
 0x134   :  { %v175_v36 = vadd.f32 %v174_v35, %v173_v34 }
 0x136   :  { %v176_v37 = vmul.f32 0.125, %v175_v36 }
 0x138   :  { %v178_v38 = vadd.f32 1e-05, %v176_v37 }
 0x13a   :  { %340 = vrsqrt.f32 %v178_v38 }
 0x144   :  { %v341_v43 = vpop.eup %340 }
 0x145   :  { %v180_v44 = vmul.f32 %v341_v43, %v177_v41 }
 0x147   :  { %v182_v46 = vmul.f32 %v180_v44, %v167_v28  ;;  %v187_v47 = vrot.slane %v180_v44, %v186_v42 }
 0x149   :  { %v183_v48 = vsub.f32 %v181_v45, %v182_v46  ;;  %v188_v49 = vmul.f32 %v187_v47, %v157_v21 }
 0x14b   :  { %v192_v50 = vrot.slane %v183_v48, %v186_v42 }
 0x14d   :  { %v193_v51 = vadd.f32 %v192_v50, %v188_v49 }
 0x14f   :  { %v194_v52 = vmax.f32 %v193_v51, -8.0 }
 0x151   :  { %v195_v53 = vmin.f32 %v194_v52, 7.9375 }
 0x153   :  { %v196_v54 = vmul.f32 16.0, %v195_v53 }
 0x155   :  { %v332_v55 = vround.rtne.f32 %v196_v54 }
 0x157   :  { %v198_v56 = vmul.f32 0.0625, %v332_v55 }
 0x159   :  { %199 = vst [vmem:[#allocation5] sm:$0xff] %v198_v56 }
 0x15a   :  { %375 = shalt.err (!%p372_p12)
}
 0x15b   :  { %s376_s9 = scalar_lea.hbm %s456_s3, 128 }
 0x15c   :  { %p377_p13 = scmp.ne.s32.totalorder %s456_s3, %s376_s9  ;;  %p380_p0 = scmp.lt.u32.totalorder %s376_s9, %s456_s3 }
 0x15e   :  { %p382_p1 = pnand %p380_p0, %p377_p13 }
 0x160   :  { %385 = shalt.err (!%p382_p1)
}
 0x161   :  { %209 = dma.vmem_to_hbm [thread:$0]  %s207_s6, 128, %s456_s3, [#allocation4]  }
 0x162   :  { %388 = dma.done.wait [#allocation4], 128  }
 0x163   :  { %389 = vsyncadd [#allocation4], 4294967168 }
 0x164   :  { %213 = vsyncpa [#allocation3], 1 }
 0x165   :  { %214 = vsyncpa [#allocation4], 1 }

</bundles_post_ra>
